<compile_context>
chip_gen: v5e
topology: v5e:2x2
jax: 0.10.0
libtpu: 0.0.40
codegen_flags: <defaults>
</compile_context>

<pallas_src>
import numpy as np
import jax
import jax.numpy as jnp
from jax.experimental import pallas as pl
from jax.experimental.pallas import tpu as pltpu

# ----------------------------- problem sizes --------------------------------
B = 2                      # batch size
V = 64                     # number of mesh vertices (synthetic, real SMPL=6890)
VP = 128                   # vertex axis padded to a multiple of 128 lanes
NB = 10                    # number of betas
NUM_BODY_JOINTS = 23
NJ = NUM_BODY_JOINTS + 1   # 24 joints incl. global root
P = NUM_BODY_JOINTS * 9    # 207 pose-blend basis
N_EXTRA = 21               # extra joints from VertexJointSelector (face+feet+tips)
JPAD = 128                 # lane-padded width of the joints output (3*NJ=72 -> 128)

# ------------------------------- kernels -------------------------------------


def _shape_pose_kernel(betas_ref, pose_ref, vt_ref, sd_ref, pd_ref, jregp_ref,
                       vposed_ref, joints_ref):
    """Whole-batch shape/pose blendshapes + joint regression.

    betas_ref : (B, NB) f32      pose_ref  : (B, P) f32
    vt_ref    : (1, 3*VP) f32    sd_ref    : (NB, 3*VP) bf16   pd_ref : (P, 3*VP) bf16
    jregp_ref : (3*VP, JPAD) f32 block-diagonal joint regressor, lane-padded
    vposed_ref: (B, 3*VP) f32    joints_ref: (B, JPAD) f32   (cols j*3+c, rest 0)
    """
    sd = sd_ref[...].astype(jnp.float32)
    pd = pd_ref[...].astype(jnp.float32)
    v_shaped = vt_ref[...] + jnp.dot(betas_ref[...], sd,
                                     preferred_element_type=jnp.float32)
    joints_ref[...] = jnp.dot(v_shaped, jregp_ref[...],
                              preferred_element_type=jnp.float32)
    vposed_ref[...] = v_shaped + jnp.dot(pose_ref[...], pd,
                                         preferred_element_type=jnp.float32)


def _skin_kernel(wT_ref, a_ref, vp_ref, verts_ref):
    """Whole-batch linear blend skinning, fully vectorized epilogue.

    wT_ref   : (NJ, VP) f32      lbs_weights^T, vertex axis zero-padded
    a_ref    : (4, B*3, NJ) f32  a_ref[d, b*3+c, j] = A[b, j, c, d]
                                 (homogeneous row dropped; transl folded into d=3)
    vp_ref   : (3, B*3, VP) f32  vp_ref[d, b*3+c, v] = posed coordinate d of (b, v)
    verts_ref: (B*3, VP) f32     row b*3+c = output coordinate c of batch b
    """
    w = wT_ref[...]
    # Translation slab (includes transl, since lbs-weight rows sum to 1).
    acc = jnp.dot(a_ref[3], w, preferred_element_type=jnp.float32)
    for d in range(3):
        acc = acc + jnp.dot(a_ref[d], w,
                            preferred_element_type=jnp.float32) * vp_ref[d]
    verts_ref[...] = acc


# ----------------------------- pallas wrappers --------------------------------

_VMEM = pl.BlockSpec(memory_space=pltpu.MemorySpace.VMEM)


def shape_pose_blend(betas, pose_feature, vt_cm, sd_cm, pd_cm, jreg_pad):
    flops = 2 * B * 3 * VP * (NB + P) + 2 * B * 3 * VP * JPAD
    bytes_accessed = (betas.size * 4 + pose_feature.size * 4 + vt_cm.size * 4
                      + sd_cm.size * 2 + pd_cm.size * 2 + jreg_pad.size * 4
                      + B * 3 * VP * 4 + B * JPAD * 4)
    return pl.pallas_call(
        _shape_pose_kernel,
        out_shape=(jax.ShapeDtypeStruct((B, 3 * VP), jnp.float32),
                   jax.ShapeDtypeStruct((B, JPAD), jnp.float32)),
        in_specs=[_VMEM] * 6,
        out_specs=(_VMEM, _VMEM),
        cost_estimate=pl.CostEstimate(flops=flops, transcendentals=0,
                                      bytes_accessed=bytes_accessed),
    )(betas, pose_feature, vt_cm, sd_cm, pd_cm, jreg_pad)


def skinning(wT_pad, a_dmaj, vp_bcast):
    flops = 2 * 4 * (B * 3) * NJ * VP + 2 * 3 * (B * 3) * VP
    bytes_accessed = (wT_pad.size * 4 + a_dmaj.size * 4 + vp_bcast.size * 4
                      + B * 3 * VP * 4)
    return pl.pallas_call(
        _skin_kernel,
        out_shape=jax.ShapeDtypeStruct((B * 3, VP), jnp.float32),
        in_specs=[_VMEM, _VMEM, _VMEM],
        out_specs=_VMEM,
        cost_estimate=pl.CostEstimate(flops=flops, transcendentals=0,
                                      bytes_accessed=bytes_accessed),
    )(wT_pad, a_dmaj, vp_bcast)


# ------------------------------ JAX glue --------------------------------------


def batch_rodrigues(rot_vecs, eps=1e-8):
    """(N, 3) axis-angle -> (N, 3, 3) rotation matrices (matches smplx)."""
    n = rot_vecs.shape[0]
    angle = jnp.linalg.norm(rot_vecs + eps, axis=1, keepdims=True)   # (N, 1)
    rot_dir = rot_vecs / angle
    cos = jnp.cos(angle)[:, None, :]                                 # (N, 1, 1)
    sin = jnp.sin(angle)[:, None, :]
    rx, ry, rz = jnp.split(rot_dir, 3, axis=1)                       # (N, 1) each
    zeros = jnp.zeros((n, 1), dtype=rot_vecs.dtype)
    K = jnp.concatenate(
        [zeros, -rz, ry, rz, zeros, -rx, -ry, rx, zeros], axis=1
    ).reshape(n, 3, 3)
    ident = jnp.eye(3, dtype=rot_vecs.dtype)[None]
    return ident + sin * K + (1.0 - cos) * jnp.matmul(K, K)


def _kintree_levels(parents):
    """Group joints by kinematic-tree depth (static, computed at trace time)."""
    parents = np.asarray(parents)
    nj = parents.shape[0]
    depth = np.zeros(nj, dtype=np.int64)
    for i in range(1, nj):
        depth[i] = depth[parents[i]] + 1
    levels = []
    for d in range(1, int(depth.max()) + 1):
        idx = np.nonzero(depth == d)[0]
        levels.append((idx, parents[idx]))
    return levels


def _make_local_transforms(rot_mats, joints, parents_np):
    bsz, nj = joints.shape[:2]
    joints_u = joints[..., None]                                     # (B, NJ, 3, 1)
    rel_joints = jnp.concatenate(
        [joints_u[:, :1], joints_u[:, 1:] - joints_u[:, parents_np[1:]]], axis=1)
    top = jnp.concatenate([rot_mats, rel_joints], axis=-1)           # (B, NJ, 3, 4)
    bottom = jnp.broadcast_to(
        jnp.array([0.0, 0.0, 0.0, 1.0], dtype=rot_mats.dtype), (bsz, nj, 1, 4))
    return jnp.concatenate([top, bottom], axis=-2), joints_u         # (B, NJ, 4, 4)


def _finish_rigid_transform(transforms, joints_u):
    bsz, nj = transforms.shape[:2]
    posed_joints = transforms[:, :, :3, 3]
    joints_h = jnp.concatenate(
        [joints_u, jnp.zeros((bsz, nj, 1, 1), dtype=joints_u.dtype)], axis=2)
    init_bone = jnp.matmul(transforms, joints_h)                     # (B, NJ, 4, 1)
    init_bone_pad = jnp.concatenate(
        [jnp.zeros((bsz, nj, 4, 3), dtype=joints_u.dtype), init_bone], axis=3)
    return posed_joints, transforms - init_bone_pad


def batch_rigid_transform_leveled(rot_mats, joints, parents_np, levels):
    """Kinematic chain with joints grouped by tree depth (8 batched composes)."""
    transforms_mat, joints_u = _make_local_transforms(rot_mats, joints, parents_np)
    transforms = jnp.zeros_like(transforms_mat)
    transforms = transforms.at[:, 0].set(transforms_mat[:, 0])
    for idx, par in levels:
        new_tf = jnp.matmul(transforms[:, par], transforms_mat[:, idx])
        transforms = transforms.at[:, idx].set(new_tf)
    return _finish_rigid_transform(transforms, joints_u)


def batch_rigid_transform_ref(rot_mats, joints, parents_np):
    """Straightforward sequential chain (reference path only)."""
    transforms_mat, joints_u = _make_local_transforms(rot_mats, joints, parents_np)
    chain = [transforms_mat[:, 0]]
    for i in range(1, joints.shape[1]):
        chain.append(jnp.matmul(chain[int(parents_np[i])], transforms_mat[:, i]))
    transforms = jnp.stack(chain, axis=1)
    return _finish_rigid_transform(transforms, joints_u)


def make_smpl_forward(params):
    """Builds a jitted SMPL.forward (pose2rot=True, return_verts=True)."""
    parents_np = np.asarray(params["parents"])
    extra_idx = np.asarray(params["extra_joints_idxs"])
    levels = _kintree_levels(parents_np)
    vt_cm, sd_cm, pd_cm = params["vt_cm"], params["sd_cm"], params["pd_cm"]
    jreg_pad, wT_pad = params["jreg_pad"], params["wT_pad"]

    @jax.jit
    def fwd(betas, global_orient, body_pose, transl):
        full_pose = jnp.concatenate([global_orient, body_pose], axis=1)   # (B, 72)
        rot_mats = batch_rodrigues(full_pose.reshape(-1, 3)).reshape(B, NJ, 3, 3)
        ident = jnp.eye(3, dtype=jnp.float32)
        pose_feature = (rot_mats[:, 1:] - ident).reshape(B, P)            # (B, 207)

        vposed_flat, joints_pad = shape_pose_blend(
            betas, pose_feature, vt_cm, sd_cm, pd_cm, jreg_pad)
        J = joints_pad[:, :3 * NJ].reshape(B, NJ, 3)                      # (B, NJ, 3)

        J_transformed, A = batch_rigid_transform_leveled(
            rot_mats, J, parents_np, levels)

        # Drop the homogeneous row of A, fold transl into the translation
        # column (lbs-weight rows sum to 1), go to d-major (4, B*3, NJ).
        A3 = A[:, :, :3, :]                                               # (B, NJ, 3, 4)
        A3 = A3.at[..., 3].add(transl[:, None, :])
        a_dmaj = jnp.transpose(A3, (3, 0, 2, 1)).reshape(4, B * 3, NJ)

        # Broadcast each posed coordinate over the 3 output rows per batch:
        # vp_bcast[d, b*3+c, v] = vposed[b, d, v].
        vp = jnp.transpose(vposed_flat.reshape(B, 3, VP), (1, 0, 2))      # (3, B, VP)
        vp_bcast = jnp.broadcast_to(
            vp[:, :, None, :], (3, B, 3, VP)).reshape(3, B * 3, VP)

        verts_rows = skinning(wT_pad, a_dmaj, vp_bcast)                   # (B*3, VP)
        vertices = jnp.transpose(verts_rows.reshape(B, 3, VP), (0, 2, 1))[:, :V, :]

        joints = J_transformed + transl[:, None, :]
        extra = vertices[:, extra_idx, :]             # VertexJointSelector
        joints = jnp.concatenate([joints, extra], axis=1)                 # (B, NJ+21, 3)
        # TODO(synk): joint_mapper is None in this configuration; not modelled.
        return vertices, joints

    return fwd


# --------------------------- pure-JAX reference --------------------------------


def smpl_forward_ref(raw, betas, global_orient, body_pose, transl):
    # The kernels consume bf16-rounded shapedirs/posedirs; quantize identically
    # here so the comparison isolates kernel correctness (f32 everywhere else).
    sd_q = raw["shapedirs"].astype(jnp.bfloat16).astype(jnp.float32)
    pd_q = raw["posedirs"].astype(jnp.bfloat16).astype(jnp.float32)
    v_shaped = raw["v_template"][None] + jnp.einsum("bl,mkl->bmk", betas, sd_q)
    Jj = jnp.einsum("bik,ji->bjk", v_shaped, raw["J_regressor"])
    full_pose = jnp.concatenate([global_orient, body_pose], axis=1)
    rot_mats = batch_rodrigues(full_pose.reshape(-1, 3)).reshape(B, NJ, 3, 3)
    pose_feature = (rot_mats[:, 1:] - jnp.eye(3, dtype=jnp.float32)).reshape(B, -1)
    pose_offsets = (pose_feature @ pd_q).reshape(B, V, 3)
    v_posed = v_shaped + pose_offsets
    J_transformed, A = batch_rigid_transform_ref(rot_mats, Jj, raw["parents"])
    W = jnp.broadcast_to(raw["lbs_weights"][None], (B, V, NJ))
    T = jnp.matmul(W, A.reshape(B, NJ, 16)).reshape(B, V, 4, 4)
    homo = jnp.concatenate([v_posed, jnp.ones((B, V, 1), jnp.float32)], axis=2)
    v_homo = jnp.matmul(T, homo[..., None])
    verts = v_homo[:, :, :3, 0]
    extra = verts[:, raw["extra_joints_idxs"], :]
    joints = jnp.concatenate([J_transformed, extra], axis=1)
    return verts + transl[:, None, :], joints + transl[:, None, :]


# --------------------------------- main ----------------------------------------

if __name__ == "__main__":
    key = jax.random.PRNGKey(0)
    ks = jax.random.split(key, 10)

    # Deterministic synthetic SMPL buffers (shapes follow the module's __init__).
    v_template = jax.random.normal(ks[0], (V, 3), jnp.float32) * 0.5        # (V, 3)
    shapedirs = jax.random.normal(ks[1], (V, 3, NB), jnp.float32) * 0.03    # (V, 3, NB)
    posedirs_raw = jax.random.normal(ks[2], (V, 3, P), jnp.float32) * 0.01  # (V, 3, P)
    posedirs = posedirs_raw.reshape(-1, P).T                                # (P, 3V)
    J_regressor = jax.random.uniform(ks[3], (NJ, V), jnp.float32)
    J_regressor = J_regressor / jnp.sum(J_regressor, axis=1, keepdims=True)
    lbs_weights = jax.random.uniform(ks[4], (V, NJ), jnp.float32)
    lbs_weights = lbs_weights / jnp.sum(lbs_weights, axis=1, keepdims=True)
    parents = np.array([-1, 0, 0, 0, 1, 2, 3, 4, 5, 6, 7, 8, 9, 9, 9, 12, 13,
                        14, 16, 17, 18, 19, 20, 21], dtype=np.int64)
    extra_joints_idxs = ((np.arange(N_EXTRA) * 5 + 3) % V).astype(np.int64)

    # Forward-pass inputs (the module's parameter defaults, given explicitly).
    betas = jax.random.normal(ks[5], (B, NB), jnp.float32) * 0.5
    global_orient = jax.random.normal(ks[6], (B, 3), jnp.float32) * 0.3
    body_pose = jax.random.normal(ks[7], (B, NUM_BODY_JOINTS * 3), jnp.float32) * 0.2
    transl = jax.random.normal(ks[8], (B, 3), jnp.float32) * 0.1

    # Kernel-friendly coordinate-major, lane-padded layouts (index = c*VP + v).
    def _pad_vertex_axis(x, axis):
        pad = [(0, 0)] * x.ndim
        pad[axis] = (0, VP - V)
        return jnp.pad(x, pad)

    vt_cm = _pad_vertex_axis(v_template.T, 1).reshape(1, 3 * VP)            # (1, 3VP) f32
    sd_cm = _pad_vertex_axis(
        jnp.transpose(shapedirs, (2, 1, 0)), 2).reshape(NB, 3 * VP)         # (NB, 3VP)
    pd_cm = _pad_vertex_axis(
        jnp.transpose(posedirs_raw, (2, 1, 0)), 2).reshape(P, 3 * VP)       # (P, 3VP)
    sd_cm = sd_cm.astype(jnp.bfloat16)       # bf16 weight operands (f32 accumulate)
    pd_cm = pd_cm.astype(jnp.bfloat16)
    wT_pad = _pad_vertex_axis(lbs_weights.T, 1)                             # (NJ, VP) f32

    # Block-diagonal joint regressor, lane-padded to JPAD=128 output columns:
    # jreg_pad[c*VP+v, j*3+c] = J_regressor[j, v]; columns 72..127 are zero.
    jreg_np = np.asarray(J_regressor)
    jreg_pad_np = np.zeros((3 * VP, JPAD), np.float32)
    for c in range(3):
        jreg_pad_np[c * VP:c * VP + V, c:3 * NJ:3] = jreg_np.T
    jreg_pad = jnp.asarray(jreg_pad_np)

    params = {
        "vt_cm": vt_cm,
        "sd_cm": sd_cm,
        "pd_cm": pd_cm,
        "jreg_pad": jreg_pad,
        "wT_pad": wT_pad,
        "parents": parents,
        "extra_joints_idxs": extra_joints_idxs,
    }
    raw = {
        "v_template": v_template,
        "shapedirs": shapedirs,
        "posedirs": posedirs,
        "J_regressor": J_regressor,
        "lbs_weights": lbs_weights,
        "parents": parents,
        "extra_joints_idxs": extra_joints_idxs,
    }

    smpl_forward = make_smpl_forward(params)
    vertices, joints = smpl_forward(betas, global_orient, body_pose, transl)
    jax.block_until_ready(vertices)
    jax.block_until_ready(joints)

    v_ref, j_ref = smpl_forward_ref(raw, betas, global_orient, body_pose, transl)
    assert vertices.shape == (B, V, 3) and joints.shape == (B, NJ + N_EXTRA, 3)
    assert np.allclose(np.asarray(vertices), np.asarray(v_ref), atol=2e-4, rtol=2e-4)
    assert np.allclose(np.asarray(joints), np.asarray(j_ref), atol=2e-4, rtol=2e-4)

    print("KERNEL_OK")
</pallas_src>

<mosaic_0001>
module attributes {stable_mosaic.version = 11 : i64} {
  func.func @_shape_pose_kernel(%arg0: memref<2x10xf32, #tpu.memory_space<vmem>>, %arg1: memref<2x207xf32, #tpu.memory_space<vmem>>, %arg2: memref<1x384xf32, #tpu.memory_space<vmem>>, %arg3: memref<10x384xbf16, #tpu.memory_space<vmem>>, %arg4: memref<207x384xbf16, #tpu.memory_space<vmem>>, %arg5: memref<384x128xf32, #tpu.memory_space<vmem>>, %arg6: memref<2x384xf32, #tpu.memory_space<vmem>>, %arg7: memref<2x128xf32, #tpu.memory_space<vmem>>) attributes {dimension_semantics = [], scalar_prefetch = 0 : i64, scratch_operands = 0 : i64, tpu.core_type = #tpu.core_type<tc>} {
    %c0 = arith.constant 0 : index
    %c0_0 = arith.constant 0 : index
    %0 = vector.load %arg3[%c0, %c0_0] : memref<10x384xbf16, #tpu.memory_space<vmem>>, vector<10x384xbf16>
    %1 = arith.extf %0 : vector<10x384xbf16> to vector<10x384xf32>
    %c0_1 = arith.constant 0 : index
    %c0_2 = arith.constant 0 : index
    %2 = vector.load %arg4[%c0_1, %c0_2] : memref<207x384xbf16, #tpu.memory_space<vmem>>, vector<207x384xbf16>
    %3 = arith.extf %2 : vector<207x384xbf16> to vector<207x384xf32>
    %c0_3 = arith.constant 0 : index
    %c0_4 = arith.constant 0 : index
    %4 = vector.load %arg2[%c0_3, %c0_4] : memref<1x384xf32, #tpu.memory_space<vmem>>, vector<1x384xf32>
    %c0_5 = arith.constant 0 : index
    %c0_6 = arith.constant 0 : index
    %5 = vector.load %arg0[%c0_5, %c0_6] : memref<2x10xf32, #tpu.memory_space<vmem>>, vector<2x10xf32>
    %cst = arith.constant dense<0.000000e+00> : vector<2x384xf32>
    %6 = tpu.matmul %5, %1, %cst {dimension_numbers = #tpu.dot_dimension_numbers<[1], [0], [0], [1], [0, 0, 1, 1], [], []>} : vector<2x10xf32>, vector<10x384xf32>, vector<2x384xf32> -> vector<2x384xf32>
    %7 = vector.broadcast %4 : vector<1x384xf32> to vector<2x384xf32>
    %8 = arith.addf %7, %6 : vector<2x384xf32>
    %c0_7 = arith.constant 0 : index
    %c0_8 = arith.constant 0 : index
    %9 = vector.load %arg5[%c0_7, %c0_8] : memref<384x128xf32, #tpu.memory_space<vmem>>, vector<384x128xf32>
    %cst_9 = arith.constant dense<0.000000e+00> : vector<2x128xf32>
    %10 = tpu.matmul %8, %9, %cst_9 {dimension_numbers = #tpu.dot_dimension_numbers<[1], [0], [0], [1], [0, 0, 1, 1], [], []>} : vector<2x384xf32>, vector<384x128xf32>, vector<2x128xf32> -> vector<2x128xf32>
    %c0_10 = arith.constant 0 : index
    %c0_11 = arith.constant 0 : index
    %11 = vector.load %arg7[%c0_10, %c0_11] : memref<2x128xf32, #tpu.memory_space<vmem>>, vector<2x128xf32>
    tpu.vector_store %arg7[%c0_10, %c0_11], %10 {strides = array<i32>} : memref<2x128xf32, #tpu.memory_space<vmem>>, vector<2x128xf32>,
    %c0_12 = arith.constant 0 : index
    %c0_13 = arith.constant 0 : index
    %12 = vector.load %arg1[%c0_12, %c0_13] : memref<2x207xf32, #tpu.memory_space<vmem>>, vector<2x207xf32>
    %cst_14 = arith.constant dense<0.000000e+00> : vector<2x384xf32>
    %13 = tpu.matmul %12, %3, %cst_14 {dimension_numbers = #tpu.dot_dimension_numbers<[1], [0], [0], [1], [0, 0, 1, 1], [], []>} : vector<2x207xf32>, vector<207x384xf32>, vector<2x384xf32> -> vector<2x384xf32>
    %14 = arith.addf %8, %13 : vector<2x384xf32>
    %c0_15 = arith.constant 0 : index
    %c0_16 = arith.constant 0 : index
    %15 = vector.load %arg6[%c0_15, %c0_16] : memref<2x384xf32, #tpu.memory_space<vmem>>, vector<2x384xf32>
    tpu.vector_store %arg6[%c0_15, %c0_16], %14 {strides = array<i32>} : memref<2x384xf32, #tpu.memory_space<vmem>>, vector<2x384xf32>,
    return
  }
}

module attributes {stable_mosaic.version = 11 : i64} {
  func.func @_skin_kernel(%arg0: memref<24x128xf32, #tpu.memory_space<vmem>>, %arg1: memref<4x6x24xf32, #tpu.memory_space<vmem>>, %arg2: memref<3x6x128xf32, #tpu.memory_space<vmem>>, %arg3: memref<6x128xf32, #tpu.memory_space<vmem>>) attributes {dimension_semantics = [], scalar_prefetch = 0 : i64, scratch_operands = 0 : i64, tpu.core_type = #tpu.core_type<tc>} {
    %c0 = arith.constant 0 : index
    %c0_0 = arith.constant 0 : index
    %0 = vector.load %arg0[%c0, %c0_0] : memref<24x128xf32, #tpu.memory_space<vmem>>, vector<24x128xf32>
    %c3 = arith.constant 3 : index
    %c0_1 = arith.constant 0 : index
    %c0_2 = arith.constant 0 : index
    %1 = vector.load %arg1[%c3, %c0_1, %c0_2] : memref<4x6x24xf32, #tpu.memory_space<vmem>>, vector<1x6x24xf32>
    %2 = vector.shape_cast %1 : vector<1x6x24xf32> to vector<6x24xf32>
    %cst = arith.constant dense<0.000000e+00> : vector<6x128xf32>
    %3 = tpu.matmul %2, %0, %cst {dimension_numbers = #tpu.dot_dimension_numbers<[1], [0], [0], [1], [0, 0, 1, 1], [], []>} : vector<6x24xf32>, vector<24x128xf32>, vector<6x128xf32> -> vector<6x128xf32>
    %c0_3 = arith.constant 0 : index
    %c0_4 = arith.constant 0 : index
    %c0_5 = arith.constant 0 : index
    %4 = vector.load %arg1[%c0_3, %c0_4, %c0_5] : memref<4x6x24xf32, #tpu.memory_space<vmem>>, vector<1x6x24xf32>
    %5 = vector.shape_cast %4 : vector<1x6x24xf32> to vector<6x24xf32>
    %cst_6 = arith.constant dense<0.000000e+00> : vector<6x128xf32>
    %6 = tpu.matmul %5, %0, %cst_6 {dimension_numbers = #tpu.dot_dimension_numbers<[1], [0], [0], [1], [0, 0, 1, 1], [], []>} : vector<6x24xf32>, vector<24x128xf32>, vector<6x128xf32> -> vector<6x128xf32>
    %c0_7 = arith.constant 0 : index
    %c0_8 = arith.constant 0 : index
    %c0_9 = arith.constant 0 : index
    %7 = vector.load %arg2[%c0_7, %c0_8, %c0_9] : memref<3x6x128xf32, #tpu.memory_space<vmem>>, vector<1x6x128xf32>
    %8 = vector.shape_cast %7 : vector<1x6x128xf32> to vector<6x128xf32>
    %9 = arith.mulf %6, %8 : vector<6x128xf32>
    %10 = arith.addf %3, %9 : vector<6x128xf32>
    %c1 = arith.constant 1 : index
    %c0_10 = arith.constant 0 : index
    %c0_11 = arith.constant 0 : index
    %11 = vector.load %arg1[%c1, %c0_10, %c0_11] : memref<4x6x24xf32, #tpu.memory_space<vmem>>, vector<1x6x24xf32>
    %12 = vector.shape_cast %11 : vector<1x6x24xf32> to vector<6x24xf32>
    %cst_12 = arith.constant dense<0.000000e+00> : vector<6x128xf32>
    %13 = tpu.matmul %12, %0, %cst_12 {dimension_numbers = #tpu.dot_dimension_numbers<[1], [0], [0], [1], [0, 0, 1, 1], [], []>} : vector<6x24xf32>, vector<24x128xf32>, vector<6x128xf32> -> vector<6x128xf32>
    %c1_13 = arith.constant 1 : index
    %c0_14 = arith.constant 0 : index
    %c0_15 = arith.constant 0 : index
    %14 = vector.load %arg2[%c1_13, %c0_14, %c0_15] : memref<3x6x128xf32, #tpu.memory_space<vmem>>, vector<1x6x128xf32>
    %15 = vector.shape_cast %14 : vector<1x6x128xf32> to vector<6x128xf32>
    %16 = arith.mulf %13, %15 : vector<6x128xf32>
    %17 = arith.addf %10, %16 : vector<6x128xf32>
    %c2 = arith.constant 2 : index
    %c0_16 = arith.constant 0 : index
    %c0_17 = arith.constant 0 : index
    %18 = vector.load %arg1[%c2, %c0_16, %c0_17] : memref<4x6x24xf32, #tpu.memory_space<vmem>>, vector<1x6x24xf32>
    %19 = vector.shape_cast %18 : vector<1x6x24xf32> to vector<6x24xf32>
    %cst_18 = arith.constant dense<0.000000e+00> : vector<6x128xf32>
    %20 = tpu.matmul %19, %0, %cst_18 {dimension_numbers = #tpu.dot_dimension_numbers<[1], [0], [0], [1], [0, 0, 1, 1], [], []>} : vector<6x24xf32>, vector<24x128xf32>, vector<6x128xf32> -> vector<6x128xf32>
    %c2_19 = arith.constant 2 : index
    %c0_20 = arith.constant 0 : index
    %c0_21 = arith.constant 0 : index
    %21 = vector.load %arg2[%c2_19, %c0_20, %c0_21] : memref<3x6x128xf32, #tpu.memory_space<vmem>>, vector<1x6x128xf32>
    %22 = vector.shape_cast %21 : vector<1x6x128xf32> to vector<6x128xf32>
    %23 = arith.mulf %20, %22 : vector<6x128xf32>
    %24 = arith.addf %17, %23 : vector<6x128xf32>
    %c0_22 = arith.constant 0 : index
    %c0_23 = arith.constant 0 : index
    %25 = vector.load %arg3[%c0_22, %c0_23] : memref<6x128xf32, #tpu.memory_space<vmem>>, vector<6x128xf32>
    tpu.vector_store %arg3[%c0_22, %c0_23], %24 {strides = array<i32>} : memref<6x128xf32, #tpu.memory_space<vmem>>, vector<6x128xf32>,
    return
  }
}

</mosaic_0001>

<bundles_post_ra>
// kernel: fwd.2
= control target key start
LH: loop header
LB: loop body
LE: loop exit
PB: predicated region body
PF: predicated region fallthrough
CT: control target
= control target key end

     0   :  { %vm171_vm0 = vcmask 1041408   ;;  %vm167_vm1 = vcmask 80896   ;;  %vm369_vm2 = vcmask 1046528   ;;  %vm366_vm3 = vcmask 646144   ;;  %s996_s3 = inlined_call_operand.vmem [shape: bf16[10,384], index: 3, kind: input, shape index: {}]   ;;  %s997_s5 = inlined_call_operand.vmem [shape: f32[384,128], index: 5, kind: input, shape index: {}]   ;;  %s998_s0 = inlined_call_operand.vmem [shape: f32[2,10], index: 0, kind: input, shape index: {}]   ;;  %s999_s4 = inlined_call_operand.vmem [shape: bf16[207,384], index: 4, kind: input, shape index: {}]   ;;  %s1000_s1 = inlined_call_operand.vmem [shape: f32[2,207], index: 1, kind: input, shape index: {}]   ;;  %s1001_s2 = inlined_call_operand.vmem [shape: f32[1,384], index: 2, kind: input, shape index: {}]   ;;  %s1002_s7 = inlined_call_operand.vmem [shape: f32[2,128], index: 7, kind: output, shape index: {1}]   ;;  %s1003_s6 = inlined_call_operand.vmem [shape: f32[2,384], index: 6, kind: output, shape index: {0}]  }
   0x1   :  { %v27_v0 = vld [vmem:[%s996_s3 + $0xc] sm:$0x11]  ;;  %v28_v1 = vld [vmem:[%s996_s3 + $0x14] sm:$0x1]  ;;  %v25_v2 = vld [vmem:[%s996_s3] sm:$0xff]  ;;  %vm508_vm4 = vcmask 1043456  }
   0x2   :  { %v32_v3 = vunpack.c.l.bf16 %v27_v0  ;;  %v34_v4 = vunpack.c.l.bf16 %v28_v1  ;;  %v29_v5 = vunpack.c.l.bf16 %v25_v2  ;;  %v26_v6 = vld [vmem:[%s996_s3 + $0x8] sm:$0xf]  ;;  %v33_v7 = vunpack.c.h.bf16 %v27_v0  ;;  %v266_v8 = vld [vmem:[%s997_s5 + $0x78] sm:$0xff]  ;;  %v265_v10 = vld [vmem:[%s997_s5 + $0x70] sm:$0xff] }
   0x3   :  { %v31_v9 = vunpack.c.l.bf16 %v26_v6  ;;  %299 = vmatpush.msra.mxu3 %v266_v8  ;;  %v166_v11 = vld [vmem:[%s998_s0] sm:$0x3]  ;;  %v30_v12 = vunpack.c.h.bf16 %v25_v2  ;;  %v282_v13 = vld [vmem:[%s997_s5 + $0xf8] sm:$0xff]  ;;  %v264_v15 = vld [vmem:[%s997_s5 + $0x68] sm:$0xff] }
   0x4   :  { %520 = vmatpush.msk.msra.mxu0 %vm171_vm0, %v32_v3  ;;  %524 = vmatpush.msk.msra.mxu2 %vm171_vm0, %v34_v4  ;;  %v602_v14 = vld [vmem:[%s999_s4 + $0xb4] sm:$0xff]  ;;  %v611_v17 = vld [vmem:[%s999_s4 + $0xa8] sm:$0xff]  ;;  %v621_v19 = vld [vmem:[%s999_s4 + $0x9c] sm:$0xff] }
   0x5   :  { %522 = vmatpush.msk.msra.mxu1 %vm171_vm0, %v33_v7  ;;  %300 = vmatpush.msra.mxu3 %v265_v10  ;;  %v132_v16 = vunpack.c.l.bf16 %v602_v14  ;;  %v281_v18 = vld [vmem:[%s997_s5 + $0xf0] sm:$0xff]  ;;  %v263_v20 = vld [vmem:[%s997_s5 + $0x60] sm:$0xff]  ;;  %v129_v21 = vunpack.c.l.bf16 %v611_v17  ;;  %v280_v22 = vld [vmem:[%s997_s5 + $0xe8] sm:$0xff]  ;;  %v126_v26 = vunpack.c.l.bf16 %v621_v19 }
   0x6   :  { %196 = vmatpush.msra.mxu0 %v29_v5  ;;  %236 = vmatpush.msra.mxu2 %v31_v9  ;;  %v634_v23 = vld [vmem:[%s999_s4 + $0x90] sm:$0xff]  ;;  %v298_v24 = vld [vmem:[%s997_s5 + $0x178] sm:$0xff]  ;;  %v279_v28 = vld [vmem:[%s997_s5 + $0xe0] sm:$0xff] }
   0x7   :  { %521 = vmatmul.msk.f32.vlgmr.msra.gmra.mxu0 %vm167_vm1, %v166_v11  ;;  %525 = vmatmul.msk.f32.vlgmr.msra.gmra.mxu2 %vm167_vm1, %v166_v11  ;;  %v262_v25 = vld [vmem:[%s997_s5 + $0x58] sm:$0xff]  ;;  %v297_v27 = vld [vmem:[%s997_s5 + $0x170] sm:$0xff]  ;;  %v652_v29 = vld [vmem:[%s999_s4 + $0x84] sm:$0xff]  ;;  %v123_v31 = vunpack.c.l.bf16 %v634_v23 }
   0x8   :  { %216 = vmatpush.msra.mxu1 %v30_v12  ;;  %319 = vmatpush.msrb.mxu0 %v282_v13  ;;  %v261_v30 = vld [vmem:[%s997_s5 + $0x50] sm:$0xff]  ;;  %v296_v32 = vld [vmem:[%s997_s5 + $0x168] sm:$0xff]  ;;  %v278_v33 = vld [vmem:[%s997_s5 + $0xd8] sm:$0xff]  ;;  %v120_v36 = vunpack.c.l.bf16 %v652_v29 }
   0x9   :  { %523 = vmatmul.msk.f32.vlgmr.msra.gmra.mxu1 %vm167_vm1, %v166_v11  ;;  %301 = vmatpush.msra.mxu3 %v264_v15  ;;  %v667_v34 = vld [vmem:[%s999_s4 + $0x78] sm:$0xff]  ;;  %v260_v35 = vld [vmem:[%s997_s5 + $0x48] sm:$0xff]  ;;  %v295_v37 = vld [vmem:[%s997_s5 + $0x160] sm:$0xff] }
   0xa   :  { %320 = vmatpush.msrb.mxu0 %v281_v18  ;;  %379 = vmatpush.msrb.mxu2 %v132_v16  ;;  %v277_v38 = vld [vmem:[%s997_s5 + $0xd0] sm:$0xff]  ;;  %v259_v40 = vld [vmem:[%s997_s5 + $0x40] sm:$0xff]  ;;  %v117_v41 = vunpack.c.l.bf16 %v667_v34  ;;  %v294_v42 = vld [vmem:[%s997_s5 + $0x158] sm:$0xff] }
   0xb   :  { %302 = vmatpush.msra.mxu3 %v263_v20  ;;  %339 = vmatpush.msrb.mxu1 %v298_v24  ;;  %v682_v39 = vld [vmem:[%s999_s4 + $0x6c] sm:$0xff]  ;;  %v697_v44 = vld [vmem:[%s999_s4 + $0x60] sm:$0xff]  ;;  %v258_v45 = vld [vmem:[%s997_s5 + $0x38] sm:$0xff] }
   0xc   :  { %321 = vmatpush.msrb.mxu0 %v280_v22  ;;  %380 = vmatpush.msrb.mxu2 %v129_v21  ;;  %v276_v43 = vld [vmem:[%s997_s5 + $0xc8] sm:$0xff]  ;;  %v114_v46 = vunpack.c.l.bf16 %v682_v39  ;;  %v293_v47 = vld [vmem:[%s997_s5 + $0x150] sm:$0xff]  ;;  %v275_v48 = vld [vmem:[%s997_s5 + $0xc0] sm:$0xff]  ;;  %v111_v51 = vunpack.c.l.bf16 %v697_v44 }
   0xd   :  { %303 = vmatpush.msra.mxu3 %v262_v25  ;;  %340 = vmatpush.msrb.mxu1 %v297_v27  ;;  %v712_v49 = vld [vmem:[%s999_s4 + $0x54] sm:$0xff]  ;;  %v292_v52 = vld [vmem:[%s997_s5 + $0x148] sm:$0xff]  ;;  %v291_v57 = vld [vmem:[%s997_s5 + $0x140] sm:$0xff] }
   0xe   :  { %322 = vmatpush.msrb.mxu0 %v279_v28  ;;  %381 = vmatpush.msrb.mxu2 %v126_v26  ;;  %v257_v50 = vld [vmem:[%s997_s5 + $0x30] sm:$0xff]  ;;  %v274_v53 = vld [vmem:[%s997_s5 + $0xb8] sm:$0xff]  ;;  %v727_v54 = vld [vmem:[%s999_s4 + $0x48] sm:$0xff]  ;;  %v108_v56 = vunpack.c.l.bf16 %v712_v49 }
   0xf   :  { %304 = vmatpush.msra.mxu3 %v261_v30  ;;  %341 = vmatpush.msrb.mxu1 %v296_v32  ;;  %v256_v55 = vld [vmem:[%s997_s5 + $0x28] sm:$0xff]  ;;  %v273_v58 = vld [vmem:[%s997_s5 + $0xb0] sm:$0xff]  ;;  %v742_v59 = vld [vmem:[%s999_s4 + $0x3c] sm:$0xff]  ;;  %v105_v61 = vunpack.c.l.bf16 %v727_v54  ;;  %v133_v32 = vunpack.c.h.bf16 %v602_v14 }
  0x10   :  { %323 = vmatpush.msrb.mxu0 %v278_v33  ;;  %382 = vmatpush.msrb.mxu2 %v123_v31  ;;  %v255_v60 = vld [vmem:[%s997_s5 + $0x20] sm:$0xff]  ;;  %v290_v62 = vld [vmem:[%s997_s5 + $0x138] sm:$0xff]  ;;  %v272_v63 = vld [vmem:[%s997_s5 + $0xa8] sm:$0xff]  ;;  %v102_v2 = vunpack.c.l.bf16 %v742_v59 }
  0x11   :  { %305 = vmatpush.msra.mxu3 %v260_v35  ;;  %342 = vmatpush.msrb.mxu1 %v295_v37  ;;  %v757_v0 = vld [vmem:[%s999_s4 + $0x30] sm:$0xff]  ;;  %v254_v1 = vld [vmem:[%s997_s5 + $0x18] sm:$0xff]  ;;  %v271_v4 = vld [vmem:[%s997_s5 + $0xa0] sm:$0xff] }
  0x12   :  { %324 = vmatpush.msrb.mxu0 %v277_v38  ;;  %383 = vmatpush.msrb.mxu2 %v120_v36  ;;  %v289_v3 = vld [vmem:[%s997_s5 + $0x130] sm:$0xff]  ;;  %v772_v5 = vld [vmem:[%s999_s4 + $0x24] sm:$0xff]  ;;  %v99_v7 = vunpack.c.l.bf16 %v757_v0  ;;  %v270_v9 = vld [vmem:[%s997_s5 + $0x98] sm:$0xff]  ;;  %v130_v38 = vunpack.c.h.bf16 %v611_v17 }
  0x13   :  { %306 = vmatpush.msra.mxu3 %v259_v40  ;;  %343 = vmatpush.msrb.mxu1 %v294_v42  ;;  %v253_v6 = vld [vmem:[%s997_s5 + $0x10] sm:$0xff]  ;;  %v288_v8 = vld [vmem:[%s997_s5 + $0x128] sm:$0xff]  ;;  %v96_v12 = vunpack.c.l.bf16 %v772_v5  ;;  %v796_v13 = vld [vmem:[%s999_s4 + $0x18] sm:$0xff] }
  0x14   :  { %325 = vmatpush.msrb.mxu0 %v276_v43  ;;  %384 = vmatpush.msrb.mxu2 %v117_v41  ;;  %v787_v10 = vld [vmem:[%s999_s4 + $0x12c] sm:$0xff]  ;;  %v287_v15 = vld [vmem:[%s997_s5 + $0x120] sm:$0xff]  ;;  %v286_v24 = vld [vmem:[%s997_s5 + $0x118] sm:$0xff]  ;;  %v93_v26 = vunpack.c.l.bf16 %v796_v13 }
  0x15   :  { %307 = vmatpush.msra.mxu3 %v258_v45  ;;  %344 = vmatpush.msrb.mxu1 %v293_v47  ;;  %v252_v11 = vld [vmem:[%s997_s5 + $0x8] sm:$0xff]  ;;  %v269_v16 = vld [vmem:[%s997_s5 + $0x90] sm:$0xff]  ;;  %v807_v18 = vld [vmem:[%s999_s4 + $0x120] sm:$0xff]  ;;  %v162_v21 = vunpack.c.l.bf16 %v787_v10 }
  0x16   :  { %326 = vmatpush.msrb.mxu0 %v275_v48  ;;  %385 = vmatpush.msrb.mxu2 %v114_v46  ;;  %v251_v20 = vld [vmem:[%s997_s5] sm:$0xff]  ;;  %v816_v22 = vld [vmem:[%s999_s4 + $0xc] sm:$0xff]  ;;  %v828_v27 = vld [vmem:[%s999_s4 + $0x114] sm:$0xff]  ;;  %v159_v28 = vunpack.c.l.bf16 %v807_v18  ;;  %v127_v46 = vunpack.c.h.bf16 %v621_v19  ;;  %v124_v19 = vunpack.c.h.bf16 %v634_v23  ;;  %v160_v23 = vunpack.c.h.bf16 %v807_v18 }
  0x17   :  { %308 = vmatpush.msra.mxu3 %v257_v50  ;;  %345 = vmatpush.msrb.mxu1 %v292_v52  ;;  %v268_v25 = vld [vmem:[%s997_s5 + $0x88] sm:$0xff]  ;;  %v834_v30 = vld [vmem:[%s999_s4] sm:$0xff]  ;;  %v285_v31 = vld [vmem:[%s997_s5 + $0x110] sm:$0xff]  ;;  %v90_v35 = vunpack.c.l.bf16 %v816_v22  ;;  %v156_v14 = vunpack.c.l.bf16 %v828_v27 }
  0x18   :  { %327 = vmatpush.msrb.mxu0 %v274_v53  ;;  %386 = vmatpush.msrb.mxu2 %v111_v51  ;;  %v267_v33 = vld [vmem:[%s997_s5 + $0x80] sm:$0xff]  ;;  %v847_v36 = vld [vmem:[%s999_s4 + $0x108] sm:$0xff]  ;;  %v66_v37 = vld [vmem:[%s999_s4 + $0xbc] sm:$0xf]  ;;  %v87_v40 = vunpack.c.l.bf16 %v834_v30  ;;  %v163_v53 = vunpack.c.h.bf16 %v787_v10  ;;  %v88_v18 = vunpack.c.h.bf16 %v834_v30 }
  0x19   :  { %309 = vmatpush.msra.mxu3 %v256_v55  ;;  %346 = vmatpush.msrb.mxu1 %v291_v57  ;;  %v859_v41 = vld [vmem:[%s999_s4 + $0xfc] sm:$0xff]  ;;  %v64_v42 = vld [vmem:[%s999_s4 + $0xb0] sm:$0xf]  ;;  %v284_v43 = vld [vmem:[%s997_s5 + $0x108] sm:$0xff]  ;;  %v153_v17 = vunpack.c.l.bf16 %v847_v36  ;;  %v134_v45 = vunpack.c.l.bf16 %v66_v37 }
  0x1a   :  { %328 = vmatpush.msrb.mxu0 %v273_v58  ;;  %387 = vmatpush.msrb.mxu2 %v108_v56  ;;  %v75_v47 = vld [vmem:[%s999_s4 + $0xf0] sm:$0xff]  ;;  %v62_v48 = vld [vmem:[%s999_s4 + $0xa4] sm:$0xf]  ;;  %v150_v50 = vunpack.c.l.bf16 %v859_v41  ;;  %v131_v51 = vunpack.c.l.bf16 %v64_v42  ;;  %v60_v56 = vld [vmem:[%s999_s4 + $0x98] sm:$0xf] }
  0x1b   :  { %310 = vmatpush.msra.mxu3 %v255_v60  ;;  %347 = vmatpush.msrb.mxu1 %v290_v62  ;;  %v283_v52 = vld [vmem:[%s997_s5 + $0x100] sm:$0xff]  ;;  %v147_v57 = vunpack.c.l.bf16 %v75_v47  ;;  %v128_v58 = vunpack.c.l.bf16 %v62_v48  ;;  %v121_v60 = vunpack.c.h.bf16 %v652_v29  ;;  %v58_v62 = vld [vmem:[%s999_s4 + $0x8c] sm:$0xf]  ;;  %v157_v29 = vunpack.c.h.bf16 %v828_v27  ;;  %v52_v27 = vld [vmem:[%s999_s4 + $0x68] sm:$0xf] }
  0x1c   :  { %329 = vmatpush.msrb.mxu0 %v272_v63  ;;  %388 = vmatpush.msrb.mxu2 %v105_v61  ;;  %v73_v55 = vld [vmem:[%s999_s4 + $0xe4] sm:$0xff]  ;;  %v71_v61 = vld [vmem:[%s999_s4 + $0xd8] sm:$0xff]  ;;  %v148_v10 = vunpack.c.h.bf16 %v75_v47  ;;  %v113_v30 = vunpack.c.l.bf16 %v52_v27 }
  0x1d   :  { %311 = vmatpush.msra.mxu3 %v254_v1  ;;  %348 = vmatpush.msrb.mxu1 %v289_v3  ;;  %v144_v63 = vunpack.c.l.bf16 %v73_v55  ;;  %v125_v1 = vunpack.c.l.bf16 %v60_v56  ;;  %v141_v3 = vunpack.c.l.bf16 %v71_v61  ;;  %v36_v47 = vld [vmem:[%s999_s4 + $0x8] sm:$0xf] }
  0x1e   :  { %330 = vmatpush.msrb.mxu0 %v271_v4  ;;  %389 = vmatpush.msrb.mxu2 %v102_v2  ;;  %v118_v2 = vunpack.c.h.bf16 %v667_v34  ;;  %v122_v4 = vunpack.c.l.bf16 %v58_v62  ;;  %v151_v34 = vunpack.c.h.bf16 %v859_v41  ;;  %v42_v41 = vld [vmem:[%s999_s4 + $0x2c] sm:$0xf]  ;;  %v89_v48 = vunpack.c.l.bf16 %v36_v47 }
  0x1f   :  { %312 = vmatpush.msra.mxu3 %v253_v6  ;;  %349 = vmatpush.msrb.mxu1 %v288_v8  ;;  %v115_v6 = vunpack.c.h.bf16 %v682_v39  ;;  %v112_v8 = vunpack.c.h.bf16 %v697_v44  ;;  %v106_v39 = vunpack.c.h.bf16 %v727_v54  ;;  %v100_v44 = vunpack.c.h.bf16 %v757_v0 }
  0x20   :  { %331 = vmatpush.msrb.mxu0 %v270_v9  ;;  %390 = vmatpush.msrb.mxu2 %v99_v7  ;;  %v154_v7 = vunpack.c.h.bf16 %v847_v36  ;;  %v109_v9 = vunpack.c.h.bf16 %v712_v49  ;;  %v94_v49 = vunpack.c.h.bf16 %v796_v13  ;;  %v91_v54 = vunpack.c.h.bf16 %v816_v22  ;;  %v67_v13 = vld [vmem:[%s999_s4 + $0xc0] sm:$0xff]  ;;  %v54_v22 = vld [vmem:[%s999_s4 + $0x74] sm:$0xf] }
  0x21   :  { %313 = vmatpush.msra.mxu3 %v252_v11  ;;  %350 = vmatpush.msrb.mxu1 %v287_v15  ;;  %v145_v11 = vunpack.c.h.bf16 %v73_v55  ;;  %v142_v15 = vunpack.c.h.bf16 %v71_v61  ;;  %v46_v36 = vld [vmem:[%s999_s4 + $0x44] sm:$0xf]  ;;  %v98_v42 = vunpack.c.l.bf16 %v42_v41 }
  0x22   :  { %332 = vmatpush.msrb.mxu0 %v269_v16  ;;  %391 = vmatpush.msrb.mxu2 %v96_v12  ;;  %v103_v12 = vunpack.c.h.bf16 %v742_v59  ;;  %v97_v16 = vunpack.c.h.bf16 %v772_v5  ;;  %v69_v59 = vld [vmem:[%s999_s4 + $0xcc] sm:$0xff]  ;;  %v56_v5 = vld [vmem:[%s999_s4 + $0x80] sm:$0xf]  ;;  %v104_v37 = vunpack.c.l.bf16 %v46_v36 }
  0x23   :  { %314 = vmatpush.msra.mxu3 %v251_v20  ;;  %351 = vmatpush.msrb.mxu1 %v286_v24  ;;  %v138_v0 = vunpack.c.l.bf16 %v69_v59  ;;  %v119_v20 = vunpack.c.l.bf16 %v56_v5  ;;  %v139_v24 = vunpack.c.h.bf16 %v69_v59 }
  0x24   :  { %333 = vmatpush.msrb.mxu0 %v268_v25  ;;  %392 = vmatpush.msrb.mxu2 %v93_v26  ;;  %v136_v25 = vunpack.c.h.bf16 %v67_v13  ;;  %v116_v26 = vunpack.c.l.bf16 %v54_v22 }
  0x25   :  { %526 = vmatpush.msk.msrb.mxu3 %vm369_vm2, %v162_v21  ;;  %352 = vmatpush.msrb.mxu1 %v285_v31  ;;  %v135_v21 = vunpack.c.l.bf16 %v67_v13  ;;  %v50_v31 = vld [vmem:[%s999_s4 + $0x5c] sm:$0xf] }
  0x26   :  { %334 = vmatpush.msrb.mxu0 %v267_v33  ;;  %393 = vmatpush.msrb.mxu2 %v90_v35  ;;  %v48_v33 = vld [vmem:[%s999_s4 + $0x50] sm:$0xf] }
  0x27   :  { %406 = vmatpush.msrb.mxu3 %v159_v28  ;;  %353 = vmatpush.msrb.mxu1 %v284_v43  ;;  %v360_v28 = vld [vmem:[%s1000_s1] sm:$0xf]  ;;  %v107_v35 = vunpack.c.l.bf16 %v48_v33 }
  0x28   :  { %419 = vmatpush.msra.mxu0 %v133_v32  ;;  %394 = vmatpush.msrb.mxu2 %v87_v40  ;;  %362 = vst [vmem:[#allocation1] ss:$4 sm:$0xff] %v360_v28  ;;  %v110_v32 = vunpack.c.l.bf16 %v50_v31  ;;  %v40_v43 = vld [vmem:[%s999_s4 + $0x20] sm:$0xf] }
  0x29   :  { %407 = vmatpush.msrb.mxu3 %v156_v14  ;;  %354 = vmatpush.msrb.mxu1 %v283_v52  ;;  %v86_v52 = vld [vmem:[%s999_s4 + $0x134] sm:$0xf] }
  0x2a   :  { %420 = vmatpush.msra.mxu0 %v130_v38  ;;  %459 = vmatpush.msra.mxu2 %v134_v45  ;;  %v44_v38 = vld [vmem:[%s999_s4 + $0x38] sm:$0xf]  ;;  %v38_v45 = vld [vmem:[%s999_s4 + $0x14] sm:$0xf]  ;;  %v164_v56 = vunpack.c.l.bf16 %v86_v52 }
  0x2b   :  { %408 = vmatpush.msrb.mxu3 %v153_v17  ;;  %528 = vmatpush.msk.msra.mxu1 %vm369_vm2, %v163_v53  ;;  %v101_v40 = vunpack.c.l.bf16 %v44_v38  ;;  %v95_v17 = vunpack.c.l.bf16 %v40_v43 }
  0x2c   :  { %421 = vmatpush.msra.mxu0 %v127_v46  ;;  %460 = vmatpush.msra.mxu2 %v131_v51  ;;  %v92_v46 = vunpack.c.l.bf16 %v38_v45 }
  0x2d   :  { %409 = vmatpush.msrb.mxu3 %v150_v50  ;;  %446 = vmatpush.msra.mxu1 %v160_v23  ;;  %v165_v50 = vld [vmem:[%s1001_s2] sm:$0x7] }
  0x2e   :  { %422 = vmatpush.msra.mxu0 %v124_v19  ;;  %461 = vmatpush.msra.mxu2 %v128_v58  ;;  %v242_v51 = vperm.slane %v165_v50, 0  ;;  %v84_v19 = vld [vmem:[%s999_s4 + $0x128] sm:$0xf]  ;;  %v243_v53 = vperm.slane %v165_v50, 1  ;;  %v82_v58 = vld [vmem:[%s999_s4 + $0x11c] sm:$0xf] }
  0x2f   :  { %410 = vmatpush.msrb.mxu3 %v147_v57  ;;  %447 = vmatpush.msra.mxu1 %v157_v29  ;;  %v363_v14 = vld.sshfl [vmem:[#allocation1] sm:$0xff pattern:$0x73625140]  ;;  %v244_v62 = vperm.slane %v165_v50, 2 }
  0x30   :  { %423 = vmatpush.msra.mxu0 %v121_v60  ;;  %462 = vmatpush.msra.mxu2 %v125_v1  ;;  %v161_v60 = vunpack.c.l.bf16 %v84_v19  ;;  %v158_v1 = vunpack.c.l.bf16 %v82_v58 }
  0x31   :  { %411 = vmatpush.msrb.mxu3 %v144_v63  ;;  %448 = vmatpush.msra.mxu1 %v154_v7  ;;  %v80_v63 = vld [vmem:[%s999_s4 + $0x110] sm:$0xf]  ;;  %v364_v7 = vld.sshfl [vmem:[#allocation1 + $0x8] sm:$0xff pattern:$0x73625140] }
  0x32   :  { %424 = vmatpush.msra.mxu0 %v118_v2  ;;  %463 = vmatpush.msra.mxu2 %v122_v4  ;;  %v78_v2 = vld [vmem:[%s999_s4 + $0x104] sm:$0xf] }
  0x33   :  { %412 = vmatpush.msrb.mxu3 %v141_v3  ;;  %449 = vmatpush.msra.mxu1 %v151_v34  ;;  %v155_v3 = vunpack.c.l.bf16 %v80_v63  ;;  %v74_v34 = vld [vmem:[%s999_s4 + $0xec] sm:$0xf] }
  0x34   :  { %425 = vmatpush.msra.mxu0 %v115_v6  ;;  %464 = vmatpush.msra.mxu2 %v119_v20  ;;  %v76_v6 = vld [vmem:[%s999_s4 + $0xf8] sm:$0xf] }
  0x35   :  { %450 = vmatpush.msra.mxu1 %v148_v10  ;;  %413 = vmatpush.msrb.mxu3 %v138_v0  ;;  %v72_v10 = vld [vmem:[%s999_s4 + $0xe0] sm:$0xf] }
  0x36   :  { %426 = vmatpush.msra.mxu0 %v112_v8  ;;  %465 = vmatpush.msra.mxu2 %v116_v26  ;;  %v152_v8 = vunpack.c.l.bf16 %v78_v2 }
  0x37   :  { %451 = vmatpush.msra.mxu1 %v145_v11  ;;  %414 = vmatpush.msrb.mxu3 %v135_v21  ;;  %v70_v11 = vld [vmem:[%s999_s4 + $0xd4] sm:$0xf] }
  0x38   :  { %427 = vmatpush.msra.mxu0 %v109_v9  ;;  %466 = vmatpush.msra.mxu2 %v113_v30  ;;  %v149_v9 = vunpack.c.l.bf16 %v76_v6 }
  0x39   :  { %452 = vmatpush.msra.mxu1 %v142_v15  ;;  %395 = vmatmul.f32.vlgmr.msrb.gmra.mxu2 %v363_v14  ;;  %v68_v15 = vld [vmem:[%s999_s4 + $0xc8] sm:$0xf] }
  0x3a   :  { %428 = vmatpush.msra.mxu0 %v106_v39  ;;  %467 = vmatpush.msra.mxu2 %v110_v32  ;;  %v146_v39 = vunpack.c.l.bf16 %v74_v34 }
  0x3b   :  { %453 = vmatpush.msra.mxu1 %v139_v24 }
  0x3c   :  { %429 = vmatpush.msra.mxu0 %v103_v12  ;;  %468 = vmatpush.msra.mxu2 %v107_v35  ;;  %v143_v12 = vunpack.c.l.bf16 %v72_v10 }
  0x3d   :  { %454 = vmatpush.msra.mxu1 %v136_v25 }
  0x3e   :  { %430 = vmatpush.msra.mxu0 %v100_v44  ;;  %469 = vmatpush.msra.mxu2 %v104_v37  ;;  %v140_v44 = vunpack.c.l.bf16 %v70_v11 }
  0x40   :  { %431 = vmatpush.msra.mxu0 %v97_v16  ;;  %470 = vmatpush.msra.mxu2 %v101_v40  ;;  %v137_v16 = vunpack.c.l.bf16 %v68_v15 }
  0x42   :  { %432 = vmatpush.msra.mxu0 %v94_v49  ;;  %471 = vmatpush.msra.mxu2 %v98_v42 }
  0x44   :  { %433 = vmatpush.msra.mxu0 %v91_v54  ;;  %472 = vmatpush.msra.mxu2 %v95_v17 }
  0x46   :  { %434 = vmatpush.msra.mxu0 %v88_v18  ;;  %473 = vmatpush.msra.mxu2 %v92_v46 }
  0x48   :  { %474 = vmatpush.msra.mxu2 %v89_v48 }
  0x49   :  { %475 = vmatmul.f32.vlgmr.msra.gmra.mxu2 %v363_v14 }
  0x84   :  { %v198_v55 = vpop.f32.mrf.mxu0 }
  0x85   :  { %v248_v57 = vadd.f32 %v242_v51, %v198_v55 }
  0x86   :  { %v218_v23 = vpop.f32.mrf.mxu1 }
  0x87   :  { %315 = vmatmul.f32.vlgmr.msra.gmra.mxu3 %v248_v57  ;;  %v249_v61 = vadd.f32 %v243_v53, %v218_v23 }
  0x88   :  { %530 = vmatpush.msk.msra.mxu3 %vm369_vm2, %v164_v56 }
  0x89   :  { %335 = vmatmul.f32.vlgmr.msrb.gmra.mxu0 %v249_v61 }
  0x8a   :  { %486 = vmatpush.msra.mxu3 %v161_v60  ;;  %v238_v29 = vpop.f32.mrf.mxu2 }
  0x8b   :  { %v250_v4 = vadd.f32 %v244_v62, %v238_v29 }
  0x8c   :  { %487 = vmatpush.msra.mxu3 %v158_v1 }
  0x8d   :  { %355 = vmatmul.f32.vlgmr.msrb.gmra.mxu1 %v250_v4 }
  0x8e   :  { %488 = vmatpush.msra.mxu3 %v155_v3 }
  0x8f   :  { %527 = vmatmul.msk.f32.vlgmr.msrb.gmra.mxu3 %vm366_vm3, %v364_v7 }
  0x90   :  { %489 = vmatpush.msra.mxu3 %v152_v8 }
  0x91   :  { %435 = vmatmul.f32.vlgmr.msra.gmra.mxu0 %v363_v14 }
  0x92   :  { %490 = vmatpush.msra.mxu3 %v149_v9 }
  0x94   :  { %491 = vmatpush.msra.mxu3 %v146_v39 }
  0x95   :  { %529 = vmatmul.msk.f32.vlgmr.msra.gmra.mxu1 %vm366_vm3, %v364_v7 }
  0x96   :  { %492 = vmatpush.msra.mxu3 %v143_v12 }
  0x98   :  { %493 = vmatpush.msra.mxu3 %v140_v44 }
  0x9a   :  { %494 = vmatpush.msra.mxu3 %v137_v16 }
  0x9b   :  { %531 = vmatmul.msk.f32.vlgmr.msra.gmra.mxu3 %vm366_vm3, %v364_v7 }
  0xbc   :  { %v396_v5 = vpop.f32.mrf.mxu2 }
  0xcc   :  { %v476_v25 = vpop.f32.mrf.mxu2 }
 0x106   :  { %v336_v49 = vpop.f32.mrf.mxu0 }
 0x10a   :  { %v316_v54 = vpop.f32.mrf.mxu3  ;;  %v356_v59 = vpop.f32.mrf.mxu1 }
 0x10b   :  { %v337_v18 = vadd.f32 %v336_v49, %v316_v54 }
 0x10d   :  { %v357_v0 = vadd.f32 %v356_v59, %v337_v18 }
 0x10e   :  { %v436_v20 = vpop.f32.mrf.mxu0 }
 0x10f   :  { %359 = vst [vmem:[%s1002_s7] sm:$0x3] %v357_v0 }
 0x112   :  { %v456_v13 = vpop.f32.mrf.mxu1  ;;  %v416_v21 = vpop.f32.mrf.mxu3 }
 0x113   :  { %v457_v22 = vadd.f32 %v456_v13, %v436_v20  ;;  %v417_v26 = vadd.f32 %v416_v21, %v396_v5 }
 0x115   :  { %v500_v24 = vadd.f32 %v457_v22, %v249_v61  ;;  %v499_v32 = vadd.f32 %v417_v26, %v248_v57 }
 0x117   :  { %v505_v30 = vrot.slane %v500_v24, 6 }
 0x119   :  { %v507_v35 = vsel %vm171_vm0, %v499_v32, %v505_v30 }
 0x11e   :  { %v496_v27 = vpop.f32.mrf.mxu3 }
 0x11f   :  { %v497_v28 = vadd.f32 %v496_v27, %v476_v25 }
 0x121   :  { %v501_v31 = vadd.f32 %v497_v28, %v250_v4 }
 0x123   :  { %v506_v33 = vrot.slane %v501_v31, 4 }
 0x125   :  { %v509_v36 = vsel %vm508_vm4, %v507_v35, %v506_v33 }
 0x126   :  { %511 = vst [vmem:[%s1003_s6] sm:$0x3f] %v509_v36 }

// kernel: fwd.3
= control target key start
LH: loop header
LB: loop body
LE: loop exit
PB: predicated region body
PF: predicated region fallthrough
CT: control target
= control target key end

     0   :  { %vm20_vm0 = vcmask 195584   ;;  %s194_s0 = inlined_call_operand.vmem [shape: f32[24,128], index: 0, kind: input, shape index: {}]   ;;  %s195_s1 = inlined_call_operand.vmem [shape: f32[4,6,24], index: 1, kind: input, shape index: {}]   ;;  %s196_s2 = inlined_call_operand.vmem [shape: f32[3,6,128], index: 2, kind: input, shape index: {}]   ;;  %s197_s3 = inlined_call_operand.vmem [shape: f32[6,128], index: 3, kind: output, shape index: {}]  }
   0x1   :  { %v16_v0 = vld [vmem:[%s194_s0 + $0x10] sm:$0xff]  ;;  %v15_v1 = vld [vmem:[%s194_s0 + $0x8] sm:$0xff]  ;;  %v14_v2 = vld [vmem:[%s194_s0] sm:$0xff] }
   0x2   :  { %87 = vmatpush.msra.mxu2 %v16_v0  ;;  %116 = vmatpush.msra.mxu3 %v16_v0  ;;  %v135_v3 = vld [vmem:[%s195_s1 + $0x8] sm:$0x3f]  ;;  %v138_v4 = vld [vmem:[%s195_s1 + $0x10] sm:$0x3f]  ;;  %v19_v5 = vld [vmem:[%s195_s1] sm:$0x3f] }
   0x3   :  { %37 = vmatpush.msra.mxu0 %v16_v0  ;;  %62 = vmatpush.msra.mxu1 %v16_v0  ;;  %v132_v6 = vld [vmem:[%s195_s1 + $0x18] sm:$0x3f]  ;;  %v44_v7 = vld [vmem:[%s196_s2] sm:$0x3f]  ;;  %v137_v11 = vld [vmem:[%s196_s2 + $0x8] sm:$0x3f] }
   0x4   :  { %88 = vmatpush.msra.mxu2 %v15_v1  ;;  %117 = vmatpush.msra.mxu3 %v15_v1  ;;  %v140_v12 = vld [vmem:[%s196_s2 + $0x10] sm:$0x3f] }
   0x5   :  { %38 = vmatpush.msra.mxu0 %v15_v1  ;;  %63 = vmatpush.msra.mxu1 %v15_v1 }
   0x6   :  { %89 = vmatpush.msra.mxu2 %v14_v2  ;;  %118 = vmatpush.msra.mxu3 %v14_v2 }
   0x7   :  { %136 = vmatmul.msk.f32.vlgmr.msra.gmra.mxu2 %vm20_vm0, %v135_v3  ;;  %139 = vmatmul.msk.f32.vlgmr.msra.gmra.mxu3 %vm20_vm0, %v138_v4 }
   0x8   :  { %39 = vmatpush.msra.mxu0 %v14_v2  ;;  %64 = vmatpush.msra.mxu1 %v14_v2 }
   0x9   :  { %133 = vmatmul.msk.f32.vlgmr.msra.gmra.mxu0 %vm20_vm0, %v19_v5  ;;  %134 = vmatmul.msk.f32.vlgmr.msra.gmra.mxu1 %vm20_vm0, %v132_v6 }
  0x86   :  { %v41_v8 = vpop.f32.mrf.mxu0  ;;  %v66_v9 = vpop.f32.mrf.mxu1 }
  0x87   :  { %v45_v10 = vmul.f32 %v44_v7, %v41_v8 }
  0x89   :  { %v67_v13 = vadd.f32 %v66_v9, %v45_v10 }
  0x8a   :  { %v91_v14 = vpop.f32.mrf.mxu2  ;;  %v120_v15 = vpop.f32.mrf.mxu3 }
  0x8b   :  { %v96_v16 = vmul.f32 %v137_v11, %v91_v14  ;;  %v125_v17 = vmul.f32 %v140_v12, %v120_v15 }
  0x8d   :  { %v97_v18 = vadd.f32 %v96_v16, %v67_v13 }
  0x8f   :  { %v126_v19 = vadd.f32 %v125_v17, %v97_v18 }
  0x91   :  { %127 = vst [vmem:[%s197_s3] sm:$0x3f] %v126_v19 }

</bundles_post_ra>
